<compile_context>
chip_gen: v7x
topology: tpu7x:2x2x1
jax: 0.10.0
libtpu: 0.0.40
codegen_flags: <defaults>
</compile_context>

<pallas_src>
import jax
import jax.numpy as jnp
from jax.experimental import pallas as pl
from jax.experimental.pallas import tpu as pltpu


def _round_up(x, m):
    return (x + m - 1) // m * m


def _pad2(x, rows, cols):
    if rows == 0 and cols == 0:
        return x
    return jnp.pad(x, ((0, rows), (0, cols)))


def _pc_kernel(err_ref, h_ref, w_ref, bw_ref, u_ref, bu_ref, o_ref):
    # Residual read once, kept in f32 for the epilogue (f32 VPU/EUP on all gens).
    h_f32 = h_ref[...].astype(jnp.float32)
    # MXU matmuls in the weight compute dtype (bf16 by default), f32 accumulation.
    we = jnp.dot(err_ref[...].astype(w_ref.dtype), w_ref[...],
                 preferred_element_type=jnp.float32) + bw_ref[...]
    uh = jnp.dot(h_ref[...].astype(u_ref.dtype), u_ref[...],
                 preferred_element_type=jnp.float32) + bu_ref[...]
    o_ref[...] = (h_f32 + jnp.tanh(we) + jnp.tanh(uh)).astype(o_ref.dtype)


def predictive_coding_layer(error, h, w_t, b_w, u_t, b_u, *,
                            batch_tile=256,
                            compute_dtype=jnp.bfloat16,
                            alias_h_to_output=False):
    """error: [B, input_dim], h: [B, hidden_dim],
    w_t: [input_dim, hidden_dim] (W^T), b_w: [1, hidden_dim],
    u_t: [hidden_dim, hidden_dim] (U^T), b_u: [1, hidden_dim]."""
    B, K = error.shape
    _, H = h.shape
    out_dtype = h.dtype

    # Small-shape fallback: padding to (8,128) tiles would dominate; plain XLA
    # fusion wins outright on all generations for these sizes.
    if K < 128 or H < 128 or B < 16:
        return (h + jnp.tanh(error @ w_t + b_w.reshape(1, -1))
                  + jnp.tanh(h @ u_t + b_u.reshape(1, -1))).astype(out_dtype)

    # Lane-dense / sublane-aligned padded dims.
    Kp = _round_up(K, 128)
    Hp = _round_up(H, 128)

    # Batch tile: multiple of 8, large enough to fill the 256-wide MXU and the
    # HBM pipe; guarantee >= 2 grid steps so the "parallel" batch axis has work
    # for both v7x TensorCores.
    TB = min(batch_tile, _round_up(B, 8))
    if _round_up(B, TB) // TB < 2 and TB >= 16:
        TB = _round_up(TB // 2, 8)

    err_item = jnp.dtype(error.dtype).itemsize
    act_item = jnp.dtype(h.dtype).itemsize
    out_item = jnp.dtype(out_dtype).itemsize
    w_item = jnp.dtype(compute_dtype).itemsize

    # VMEM budget: error/h/out tiles are double-buffered by the pipeline;
    # weights + biases are single-buffered (pl.Buffered(1)) and resident.
    weight_bytes = (Kp * Hp + Hp * Hp) * w_item + 2 * Hp * 4  # biases are f32

    def tile_bytes(tb):
        return tb * Kp * err_item + tb * Hp * act_item + tb * Hp * out_item

    try:
        vmem_cap = getattr(pltpu.get_tpu_info(), "vmem_capacity_bytes",
                           128 * 1024 * 1024)
    except Exception:  # pragma: no cover - defensive; assume 128 MiB
        vmem_cap = 128 * 1024 * 1024
    budget = int(0.85 * vmem_cap)          # leave headroom for compiler scratch
    headroom = 2 * 1024 * 1024

    # Shrink the batch tile until everything fits the per-generation budget.
    while TB > 8 and 2 * tile_bytes(TB) + weight_bytes + headroom > budget:
        TB = max(8, _round_up(TB // 2, 8))

    Bp = _round_up(B, TB)
    n_tiles = Bp // TB

    vmem_limit = int(min(budget, 2 * tile_bytes(TB) + weight_bytes + headroom))
    vmem_limit = max(vmem_limit, 8 * 1024 * 1024)

    # Activation padding only when actually needed (avoids an extra HBM pass).
    err_p = _pad2(error, Bp - B, Kp - K)
    h_p = _pad2(h, Bp - B, Hp - H)
    # Call-invariant weight prep (pad once + cast to MXU compute dtype); hoist
    # this out of the per-call path if the layer is applied repeatedly.
    w_c = _pad2(w_t, Kp - K, Hp - H).astype(compute_dtype)
    u_c = _pad2(u_t, Hp - H, Hp - H).astype(compute_dtype)
    bw_p = _pad2(b_w.reshape(1, -1), 0, Hp - H).astype(jnp.float32)
    bu_p = _pad2(b_u.reshape(1, -1), 0, Hp - H).astype(jnp.float32)

    cost = pl.CostEstimate(
        flops=2 * Bp * (Kp + Hp) * Hp,
        transcendentals=2 * Bp * Hp,
        bytes_accessed=(Bp * Kp * err_item + Bp * Hp * act_item
                        + Bp * Hp * out_item
                        + (Kp * Hp + Hp * Hp) * w_item + 2 * Hp * 4),
    )

    resident = dict(pipeline_mode=pl.Buffered(1))  # constant index_map operands

    extra_kwargs = {}
    if alias_h_to_output:
        # h_p and the output are both (Bp, Hp) in out_dtype; worthwhile under
        # jit with donated h. Off by default for eager callers that keep h.
        extra_kwargs["input_output_aliases"] = {1: 0}

    out_p = pl.pallas_call(
        _pc_kernel,
        out_shape=jax.ShapeDtypeStruct((Bp, Hp), out_dtype),
        grid=(n_tiles,),
        in_specs=[
            pl.BlockSpec((TB, Kp), lambda i: (i, 0)),              # error tile
            pl.BlockSpec((TB, Hp), lambda i: (i, 0)),              # h tile
            pl.BlockSpec((Kp, Hp), lambda i: (0, 0), **resident),  # W^T resident
            pl.BlockSpec((1, Hp), lambda i: (0, 0), **resident),   # b_W resident
            pl.BlockSpec((Hp, Hp), lambda i: (0, 0), **resident),  # U^T resident
            pl.BlockSpec((1, Hp), lambda i: (0, 0), **resident),   # b_U resident
        ],
        out_specs=pl.BlockSpec((TB, Hp), lambda i: (i, 0)),
        compiler_params=pltpu.CompilerParams(
            dimension_semantics=("parallel",),
            vmem_limit_bytes=vmem_limit,
        ),
        cost_estimate=cost,
        **extra_kwargs,
    )(err_p, h_p, w_c, bw_p, u_c, bu_p)

    if Bp != B or Hp != H:
        out_p = out_p[:B, :H]
    return out_p


def init_params(key, input_dim, hidden_dim, dtype=jnp.float32):
    """Deterministic init mirroring nn.Linear (uniform +/- 1/sqrt(fan_in)).
    Weights returned pre-transposed: W^T is [input_dim, hidden_dim]."""
    k1, k2, k3, k4 = jax.random.split(key, 4)
    bw_bound = 1.0 / jnp.sqrt(input_dim)
    bu_bound = 1.0 / jnp.sqrt(hidden_dim)
    w_t = jax.random.uniform(k1, (input_dim, hidden_dim), dtype,
                             minval=-bw_bound, maxval=bw_bound)
    b_w = jax.random.uniform(k2, (1, hidden_dim), dtype,
                             minval=-bw_bound, maxval=bw_bound)
    u_t = jax.random.uniform(k3, (hidden_dim, hidden_dim), dtype,
                             minval=-bu_bound, maxval=bu_bound)
    b_u = jax.random.uniform(k4, (1, hidden_dim), dtype,
                             minval=-bu_bound, maxval=bu_bound)
    return w_t, b_w, u_t, b_u


if __name__ == "__main__":
    key = jax.random.PRNGKey(0)

    # Case 1: small shapes matching the module's scale (exercises the
    # small-shape fallback path where padding-to-128 lanes would dominate).
    input_dim, hidden_dim, batch = 16, 32, 8
    k_err, k_h, k_par, key = jax.random.split(key, 4)
    error = jax.random.normal(k_err, (batch, input_dim), jnp.float32)
    h = jax.random.normal(k_h, (batch, hidden_dim), jnp.float32)
    w_t, b_w, u_t, b_u = init_params(k_par, input_dim, hidden_dim)
    out = jax.block_until_ready(
        predictive_coding_layer(error, h, w_t, b_w, u_t, b_u))
    ref = h + jnp.tanh(error @ w_t + b_w) + jnp.tanh(h @ u_t + b_u)
    assert out.shape == (batch, hidden_dim)
    assert jnp.allclose(out, ref, atol=1e-5, rtol=1e-5)

    # Case 2: shapes that exercise the Pallas kernel path (lane-aligned dims,
    # two batch tiles so the pipeline + parallel batch axis are used,
    # bf16 MXU inputs with f32 accumulation/epilogue).
    input_dim, hidden_dim, batch = 128, 256, 64
    k_err, k_h, k_par, key = jax.random.split(key, 4)
    error = jax.random.normal(k_err, (batch, input_dim), jnp.float32)
    h = jax.random.normal(k_h, (batch, hidden_dim), jnp.float32)
    w_t, b_w, u_t, b_u = init_params(k_par, input_dim, hidden_dim)
    out = jax.block_until_ready(
        predictive_coding_layer(error, h, w_t, b_w, u_t, b_u))
    ref = h + jnp.tanh(error @ w_t + b_w) + jnp.tanh(h @ u_t + b_u)
    assert out.shape == (batch, hidden_dim)
    # bf16 MXU inputs (f32 accumulation) -> loosened tolerance vs f32 reference.
    assert jnp.allclose(out, ref, atol=3e-2, rtol=3e-2)

    print("KERNEL_OK")
</pallas_src>

<mosaic_0001>
module attributes {stable_mosaic.version = 11 : i64} {
  func.func @_pc_kernel(%arg0: i32, %arg1: memref<32x128xf32, #tpu.memory_space<vmem>>, %arg2: memref<32x256xf32, #tpu.memory_space<vmem>>, %arg3: memref<128x256xbf16, #tpu.memory_space<vmem>>, %arg4: memref<1x256xf32, #tpu.memory_space<vmem>>, %arg5: memref<256x256xbf16, #tpu.memory_space<vmem>>, %arg6: memref<1x256xf32, #tpu.memory_space<vmem>>, %arg7: memref<32x256xf32, #tpu.memory_space<vmem>>) attributes {dimension_semantics = [#tpu.dimension_semantics<parallel>], iteration_bounds = array<i64: 2>, scalar_prefetch = 0 : i64, scratch_operands = 0 : i64, tpu.core_type = #tpu.core_type<tc>, window_params = [{transform_indices = @transform_0, window_bounds = array<i64: 32, 128>}, {transform_indices = @transform_1, window_bounds = array<i64: 32, 256>}, {pipeline_mode = #tpu.pipeline_mode<synchronous>, transform_indices = @transform_2, window_bounds = array<i64: 128, 256>}, {pipeline_mode = #tpu.pipeline_mode<synchronous>, transform_indices = @transform_3, window_bounds = array<i64: 1, 256>}, {pipeline_mode = #tpu.pipeline_mode<synchronous>, transform_indices = @transform_4, window_bounds = array<i64: 256, 256>}, {pipeline_mode = #tpu.pipeline_mode<synchronous>, transform_indices = @transform_5, window_bounds = array<i64: 1, 256>}, {transform_indices = @transform_6, window_bounds = array<i64: 32, 256>}]} {
    %c0 = arith.constant 0 : index
    %c0_0 = arith.constant 0 : index
    %0 = vector.load %arg2[%c0, %c0_0] : memref<32x256xf32, #tpu.memory_space<vmem>>, vector<32x256xf32>
    %c0_1 = arith.constant 0 : index
    %c0_2 = arith.constant 0 : index
    %1 = vector.load %arg1[%c0_1, %c0_2] : memref<32x128xf32, #tpu.memory_space<vmem>>, vector<32x128xf32>
    %2 = arith.truncf %1 : vector<32x128xf32> to vector<32x128xbf16>
    %c0_3 = arith.constant 0 : index
    %c0_4 = arith.constant 0 : index
    %3 = vector.load %arg3[%c0_3, %c0_4] : memref<128x256xbf16, #tpu.memory_space<vmem>>, vector<128x256xbf16>
    %cst = arith.constant dense<0.000000e+00> : vector<32x256xf32>
    %4 = tpu.matmul %2, %3, %cst {dimension_numbers = #tpu.dot_dimension_numbers<[1], [0], [0], [1], [0, 0, 1, 1], [], []>} : vector<32x128xbf16>, vector<128x256xbf16>, vector<32x256xf32> -> vector<32x256xf32>
    %c0_5 = arith.constant 0 : index
    %c0_6 = arith.constant 0 : index
    %5 = vector.load %arg4[%c0_5, %c0_6] : memref<1x256xf32, #tpu.memory_space<vmem>>, vector<1x256xf32>
    %6 = vector.broadcast %5 : vector<1x256xf32> to vector<32x256xf32>
    %7 = arith.addf %4, %6 : vector<32x256xf32>
    %c0_7 = arith.constant 0 : index
    %c0_8 = arith.constant 0 : index
    %8 = vector.load %arg2[%c0_7, %c0_8] : memref<32x256xf32, #tpu.memory_space<vmem>>, vector<32x256xf32>
    %9 = arith.truncf %8 : vector<32x256xf32> to vector<32x256xbf16>
    %c0_9 = arith.constant 0 : index
    %c0_10 = arith.constant 0 : index
    %10 = vector.load %arg5[%c0_9, %c0_10] : memref<256x256xbf16, #tpu.memory_space<vmem>>, vector<256x256xbf16>
    %cst_11 = arith.constant dense<0.000000e+00> : vector<32x256xf32>
    %11 = tpu.matmul %9, %10, %cst_11 {dimension_numbers = #tpu.dot_dimension_numbers<[1], [0], [0], [1], [0, 0, 1, 1], [], []>} : vector<32x256xbf16>, vector<256x256xbf16>, vector<32x256xf32> -> vector<32x256xf32>
    %c0_12 = arith.constant 0 : index
    %c0_13 = arith.constant 0 : index
    %12 = vector.load %arg6[%c0_12, %c0_13] : memref<1x256xf32, #tpu.memory_space<vmem>>, vector<1x256xf32>
    %13 = vector.broadcast %12 : vector<1x256xf32> to vector<32x256xf32>
    %14 = arith.addf %11, %13 : vector<32x256xf32>
    %15 = math.tanh %7 : vector<32x256xf32>
    %16 = arith.addf %0, %15 : vector<32x256xf32>
    %17 = math.tanh %14 : vector<32x256xf32>
    %18 = arith.addf %16, %17 : vector<32x256xf32>
    %c0_14 = arith.constant 0 : index
    %c0_15 = arith.constant 0 : index
    %19 = vector.load %arg7[%c0_14, %c0_15] : memref<32x256xf32, #tpu.memory_space<vmem>>, vector<32x256xf32>
    tpu.vector_store %arg7[%c0_14, %c0_15], %18 {strides = array<i32>} : memref<32x256xf32, #tpu.memory_space<vmem>>, vector<32x256xf32>,
    return
  }
  func.func @transform_0(%arg0: i32) -> (i32, i32) {
    %c0_i32 = arith.constant 0 : i32
    %c0_i32_0 = arith.constant 0 : i32
    return %arg0, %c0_i32 : i32, i32
  }
  func.func @transform_1(%arg0: i32) -> (i32, i32) {
    %c0_i32 = arith.constant 0 : i32
    %c0_i32_0 = arith.constant 0 : i32
    return %arg0, %c0_i32 : i32, i32
  }
  func.func @transform_2(%arg0: i32) -> (i32, i32) {
    %c0_i32 = arith.constant 0 : i32
    %c0_i32_0 = arith.constant 0 : i32
    %c0_i32_1 = arith.constant 0 : i32
    return %c0_i32, %c0_i32_0 : i32, i32
  }
  func.func @transform_3(%arg0: i32) -> (i32, i32) {
    %c0_i32 = arith.constant 0 : i32
    %c0_i32_0 = arith.constant 0 : i32
    %c0_i32_1 = arith.constant 0 : i32
    return %c0_i32, %c0_i32_0 : i32, i32
  }
  func.func @transform_4(%arg0: i32) -> (i32, i32) {
    %c0_i32 = arith.constant 0 : i32
    %c0_i32_0 = arith.constant 0 : i32
    %c0_i32_1 = arith.constant 0 : i32
    return %c0_i32, %c0_i32_0 : i32, i32
  }
  func.func @transform_5(%arg0: i32) -> (i32, i32) {
    %c0_i32 = arith.constant 0 : i32
    %c0_i32_0 = arith.constant 0 : i32
    %c0_i32_1 = arith.constant 0 : i32
    return %c0_i32, %c0_i32_0 : i32, i32
  }
  func.func @transform_6(%arg0: i32) -> (i32, i32) {
    %c0_i32 = arith.constant 0 : i32
    %c0_i32_0 = arith.constant 0 : i32
    return %arg0, %c0_i32 : i32, i32
  }
}

</mosaic_0001>

<bundles_post_ra>
// kernel: tpu_custom_call.1
= control target key start
LH: loop header
LB: loop body
LE: loop exit
PB: predicated region body
PF: predicated region fallthrough
CT: control target
= control target key end

     0   :  { %s1809_s0 = inlined_call_operand.hbm [shape: f32[64,128], index: 0, kind: input, shape index: {}]   ;;  %s1810_s1 = inlined_call_operand.hbm [shape: f32[64,256], index: 1, kind: input, shape index: {}]   ;;  %s1811_s2 = inlined_call_operand.hbm [shape: bf16[128,256], index: 2, kind: input, shape index: {}]   ;;  %s1812_s3 = inlined_call_operand.vmem [shape: f32[1,256], index: 3, kind: input, shape index: {}]   ;;  %s1813_s4 = inlined_call_operand.hbm [shape: bf16[256,256], index: 4, kind: input, shape index: {}]   ;;  %s1814_s5 = inlined_call_operand.vmem [shape: f32[1,256], index: 5, kind: input, shape index: {}]   ;;  %s1815_s6 = inlined_call_operand.hbm [shape: f32[64,256], index: 6, kind: output, shape index: {}]  }
   0x1   :  { %1821 = sst [smem:[#allocation17_spill]] %s1809_s0 }
   0x2   :  { %1822 = sst [smem:[#allocation18_spill]] %s1811_s2 }
   0x3   :  { %1823 = sst [smem:[#allocation19_spill]] %s1813_s4 }
   0x4   :  { %11 = vsyncpa [#allocation3], 0 }
   0x5   :  { %13 = vsyncpa [#allocation3 + $0x1], 0 }
   0x6   :  { %14 = vsyncpa [#allocation6], 0 }
   0x7   :  { %16 = vsyncpa [#allocation6 + $0x1], 0 }
   0x8   :  { %17 = vsyncpa [#allocation9], 0 }
   0x9   :  { %18 = vsyncpa [#allocation4], 0 }
   0xa   :  { %20 = vsyncpa [#allocation4 + $0x1], 0  ;;  %s1453_s21 = smov 0   ;;  %s1455_s22 = smov 0  }
   0xb   :  { %s1457_s23 = smov 0   ;;  %s1459_s24 = smov 0  }
   0xc LB: > { %s1474_s25 = sadd.s32 4294967295, %s1404_s24   ;;  %s950_s26 = sadd.s32 4294967294, %s1404_s24   ;;  %s1404_s24 = sphi %s1459_s24, %s1850_s24   ;;  %s1400_s23 = sphi %s1457_s23, %s1849_s23   ;;  %s1396_s22 = sphi %s1455_s22, %s1848_s22   ;;  %s1392_s21 = sphi %s1453_s21, %s1847_s21  }
   0xd   : > { %p46_p0 = scmp.ne.s32.totalorder %s1396_s22, %s1392_s21  ;;  %p1816_p1 = scmp.eq.s32.totalorder %s1474_s25, 0 }
   0xe   : > { %p186_p3 = scmp.eq.s32.totalorder %s950_s26, 1  ;;  %p951_p5 = scmp.ge.s32.totalorder %s1404_s24, 1 }
   0xf   : > { %p1483_p4 = por %p1816_p1, %p46_p0  ;;  %p193_p7 = scmp.lt.s32.totalorder %s1404_s24, 3 }
  0x10   : > { %p1488_p6 = por %p186_p3, %p46_p0  ;;  %s1406_s30 = smov [#allocation7]  }
  0x11   : > { %s1824_s27 = scalar_select %p1483_p4, 1, 0 }
  0x12   : > { %s1825_s28 = scalar_select %p1488_p6, 1, 0 }
  0x13   : > { %p1493_p8 = pnand %p951_p5, %p193_p7  ;;  %s205_s7 = sshll.u32 %s1406_s30, 4  ;;  %s1497_s7 = int_to_ptr.vmem [resolvable:$true] %s205_s7 }
  0x14   : > { %s1407_s9 = smov [#allocation8]   ;;  %s1828_s2 = sld [smem:[#allocation18_spill]] }
  0x15   : > { %p1041_p9 = pneg %p1493_p8  ;;  %s221_s10 = sshll.u32 %s1407_s9, 4  ;;  %s1508_s10 = int_to_ptr.vmem [resolvable:$true] %s221_s10 }
  0x17   : > { %p1504_p11 = pnand %p1041_p9, %p1816_p1 }
  0x19   : > { %p1212_p13 = pneg %p1504_p11 }
  0x1a   : > { %s1210_s13 = scalar_lea.hbm %s1828_s2, 2048 }
  0x1b   : > { %p1211_p12 = scmp.ne.s32.totalorder %s1828_s2, %s1210_s13  ;;  %p1217_p5 = scmp.lt.u32.totalorder %s1210_s13, %s1828_s2 }
  0x1d   : > { %p1213_p0 = pnand %p1212_p13, %p1211_p12 }
  0x1f   : > { %p1214_p3 = pneg %p1213_p0 }
  0x21   : > { %p1219_p7 = pnand %p1217_p5, %p1214_p3 }
  0x23   : > { %1222 = shalt.err (!%p1219_p7)
}
  0x24   : > { %s1223_s18 = scalar_lea.vmem %s1497_s7, 2048  ;;  %p1231_p2 = scmp.lt.s32.totalorder %s1497_s7, %s1497_s7 }
  0x25   : > { %p1224_p9 = scmp.ne.s32.totalorder %s1497_s7, %s1223_s18  ;;  %p1232_p12 = scmp.lt.s32.totalorder %s1223_s18, %s1223_s18 }
  0x27   : > { %p1226_p10 = pnand %p1224_p9, %p1212_p13  ;;  %p1233_p0 = por %p1232_p12, %p1231_p2 }
  0x29   : > { %p1227_p1 = pneg %p1226_p10 }
  0x2b   : > { %p1234_p6 = pnand %p1233_p0, %p1227_p1 }
  0x2d   : > { %1237 = shalt.err (!%p1234_p6)
}
  0x2e   : > { %s1817_s19 = smov 128   ;;  %s1818_s20 = smov 8  }
  0x2f   : > { %1044 = dma.hbm_to_vmem [thread:$0]  (!%p1504_p11), %s1828_s2, 2048, %s1497_s7, [#allocation6], %s1817_s19, %s1817_s19, %s1818_s20  }
  0x30   : > { %s1829_s4 = sld [smem:[#allocation19_spill]] }
  0x36   : > { %s1238_s12 = scalar_lea.hbm %s1829_s4, 4096 }
  0x37   : > { %p1239_p1 = scmp.ne.s32.totalorder %s1829_s4, %s1238_s12  ;;  %p1245_p10 = scmp.lt.u32.totalorder %s1238_s12, %s1829_s4 }
  0x39   : > { %p1241_p2 = pnand %p1239_p1, %p1212_p13 }
  0x3b   : > { %p1242_p6 = pneg %p1241_p2 }
  0x3d   : > { %p1247_p3 = pnand %p1245_p10, %p1242_p6 }
  0x3f   : > { %1250 = shalt.err (!%p1247_p3)
}
  0x40   : > { %s1251_s7 = scalar_lea.vmem %s1508_s10, 4096  ;;  %p1259_p12 = scmp.lt.s32.totalorder %s1508_s10, %s1508_s10 }
  0x41   : > { %p1252_p5 = scmp.ne.s32.totalorder %s1508_s10, %s1251_s7  ;;  %p1260_p0 = scmp.lt.s32.totalorder %s1251_s7, %s1251_s7 }
  0x43   : > { %p1254_p7 = pnand %p1252_p5, %p1212_p13  ;;  %p1261_p1 = por %p1260_p0, %p1259_p12 }
  0x45   : > { %p1255_p9 = pneg %p1254_p7 }
  0x47   : > { %p1262_p2 = pnand %p1261_p1, %p1255_p9 }
  0x49   : > { %1265 = shalt.err (!%p1262_p2)
}
  0x4a   : > { %1047 = dma.hbm_to_vmem [thread:$0]  (!%p1504_p11), %s1829_s4, 4096, %s1508_s10, [#allocation9], %s1817_s19, %s1817_s19, %s1818_s20  }
  0x4b   : > { %s1569_s8 = sadd.s32 1, %s1404_s24   ;;  %s33_s26 = sadd.s32 1, %s1400_s23 }
  0x4c   : > { %s30_s30 = ssub.s32 %s1404_s24, %s1569_s8  ;;  %p40_p13 = scmp.ne.s32.totalorder %s1400_s23, %s1396_s22 }
  0x4d   : > { %p31_p6 = scmp.eq.s32.totalorder %s30_s30, 0  ;;  %p41_p10 = scmp.eq.s32.totalorder %s1404_s24, 0 }
  0x4e   : > { %p1830_p3 = scmp.eq.s32.totalorder %s1474_s25, 1  ;;  %p1061_p7 = scmp.lt.s32.totalorder %s1404_s24, 2 }
  0x4f   : > { %s1585_s11 = scalar_select %p31_p6, %s1400_s23, %s33_s26  }
  0x50   : > { %p1579_p5 = por %p1830_p3, %p40_p13  ;;  %p42_p9 = por %p41_p10, %p40_p13 }
  0x51   : > { %1832 = sst [smem:[#allocation16_spill]] %s1585_s11  ;;  %s1588_s12 = sand.u32 1, %s1400_s23  }
  0x52   : > { %s1831_s9 = scalar_select %p1579_p5, 1, 0 }
  0x53   : > { %s955_s10 = sshll.u32 %s1588_s12, 5  ;;  %s1022_s13 = sshll.u32 %s1404_s24, 9 }
  0x54   : > { %s1833_s0 = sld [smem:[#allocation17_spill]]  ;;  %s242_s7 = scalar_lea.vmem [#allocation2], %s955_s10 }
  0x55   : > { %s249_s17 = sshll.u32 %s242_s7, 4  ;;  %p1599_p11 = pnand %p1061_p7, %p42_p9  ;;  %s1597_s17 = int_to_ptr.vmem [resolvable:$true] %s249_s17 }
  0x56   : > { %s958_s30 = sshll.u32 %s1588_s12, 6  ;;  %s239_s19 = scalar_lea.sflag [#allocation3], %s1588_s12 }
  0x57   : > { %p1268_p0 = pneg %p1599_p11 }
  0x5a   : > { %s1595_s16 = scalar_lea.hbm %s1833_s0, %s1022_s13  ;;  %s1271_s15 = scalar_lea.hbm %s1833_s0, 1024 }
  0x5b   : > { %s1266_s14 = scalar_lea.hbm %s1595_s16, 512  ;;  %p1272_p13 = scmp.lt.u32.totalorder %s1595_s16, %s1833_s0 }
  0x5c   : > { %p1267_p12 = scmp.ne.s32.totalorder %s1595_s16, %s1266_s14  ;;  %p1273_p6 = scmp.lt.u32.totalorder %s1271_s15, %s1266_s14 }
  0x5d   : > { %p1275_p3 = scmp.lt.u32.totalorder %s1266_s14, %s1595_s16 }
  0x5e   : > { %p1269_p1 = pnand %p1268_p0, %p1267_p12  ;;  %p1274_p10 = por %p1273_p6, %p1272_p13 }
  0x60   : > { %p1270_p2 = pneg %p1269_p1  ;;  %p1276_p7 = por %p1275_p3, %p1274_p10 }
  0x62   : > { %p1277_p9 = pnand %p1276_p7, %p1270_p2 }
  0x64   : > { %1280 = shalt.err (!%p1277_p9)
}
  0x65   : > { %s1281_s26 = scalar_lea.vmem %s1597_s17, 512  ;;  %s1410_s10 = smov [#allocation2]  }
  0x66   : > { %p1282_p12 = scmp.ne.s32.totalorder %s1597_s17, %s1281_s26  ;;  %s1286_s13 = sshll.u32 %s1410_s10, 4  ;;  %s1287_s13 = int_to_ptr.vmem [resolvable:$false] %s1286_s13 }
  0x67   : > { %s1288_s20 = scalar_lea.vmem %s1287_s13, 1024  ;;  %p1289_p4 = scmp.lt.s32.totalorder %s1597_s17, %s1287_s13 }
  0x68   : > { %p1284_p1 = pnand %p1282_p12, %p1268_p0  ;;  %p1290_p13 = scmp.lt.s32.totalorder %s1288_s20, %s1281_s26 }
  0x6a   : > { %p1285_p5 = pneg %p1284_p1  ;;  %p1291_p6 = por %p1290_p13, %p1289_p4 }
  0x6c   : > { %p1292_p10 = pnand %p1291_p6, %p1285_p5 }
  0x6e   : > { %1295 = shalt.err (!%p1292_p10)
}
  0x6f   : > { %s1835_s14 = smov 8   ;;  %s1836_s15 = smov 128  }
  0x70   : > { %1051 = dma.hbm_to_vmem [thread:$0]  (!%p1599_p11), %s1595_s16, 512, %s1597_s17, %s239_s19, %s1836_s15, %s1836_s15, %s1835_s14  }
  0x71   : > { %s1024_s7 = sshll.u32 %s1404_s24, 10  ;;  %s263_s20 = scalar_lea.vmem [#allocation5], %s958_s30 }
  0x72   : > { %s1640_s13 = scalar_lea.hbm %s1810_s1, %s1024_s7  ;;  %s271_s0 = sshll.u32 %s263_s20, 4  ;;  %s1644_s0 = int_to_ptr.vmem [resolvable:$true] %s271_s0 }
  0x73   : > { %s1837_s2 = sand.u32 1, %s1404_s24   ;;  %s1296_s11 = scalar_lea.hbm %s1640_s13, 1024 }
  0x74   : > { %s1648_s4 = scalar_lea.sflag [#allocation6], %s1837_s2  ;;  %p1297_p4 = scmp.ne.s32.totalorder %s1640_s13, %s1296_s11 }
  0x75   : > { %s1301_s12 = scalar_lea.hbm %s1810_s1, 2048  ;;  %p1302_p3 = scmp.lt.u32.totalorder %s1640_s13, %s1810_s1 }
  0x76   : > { %p1299_p5 = pnand %p1297_p4, %p1268_p0  ;;  %p1303_p7 = scmp.lt.u32.totalorder %s1301_s12, %s1296_s11 }
  0x77   : > { %p1305_p12 = scmp.lt.u32.totalorder %s1296_s11, %s1640_s13 }
  0x78   : > { %p1300_p2 = pneg %p1299_p5  ;;  %p1304_p9 = por %p1303_p7, %p1302_p3 }
  0x7a   : > { %p1306_p1 = por %p1305_p12, %p1304_p9 }
  0x7c   : > { %p1307_p13 = pnand %p1306_p1, %p1300_p2 }
  0x7e   : > { %1310 = shalt.err (!%p1307_p13)
}
  0x7f   : > { %s1311_s2 = scalar_lea.vmem %s1644_s0, 1024  ;;  %s1411_s30 = smov [#allocation5]  }
  0x80   : > { %p1312_p6 = scmp.ne.s32.totalorder %s1644_s0, %s1311_s2  ;;  %s1316_s15 = sshll.u32 %s1411_s30, 4  ;;  %s1317_s15 = int_to_ptr.vmem [resolvable:$false] %s1316_s15 }
  0x81   : > { %s1318_s7 = scalar_lea.vmem %s1317_s15, 2048  ;;  %p1319_p5 = scmp.lt.s32.totalorder %s1644_s0, %s1317_s15 }
  0x82   : > { %p1314_p10 = pnand %p1312_p6, %p1268_p0  ;;  %p1320_p3 = scmp.lt.s32.totalorder %s1318_s7, %s1311_s2 }
  0x84   : > { %p1315_p4 = pneg %p1314_p10  ;;  %p1321_p7 = por %p1320_p3, %p1319_p5 }
  0x86   : > { %p1322_p9 = pnand %p1321_p7, %p1315_p4 }
  0x88   : > { %1325 = shalt.err (!%p1322_p9)
}
  0x89   : > { %s1412_s11 = smov 256   ;;  %s1413_s10 = smov 16  }
  0x8a   : > { %1054 = dma.hbm_to_vmem [thread:$0]  (!%p1599_p11), %s1640_s13, 1024, %s1644_s0, %s1648_s4, %s1412_s11, %s1412_s11, %s1413_s10  }
  0x8b   : > { %283 = sbr.rel (%p1493_p8) target bundleno = 474 (0x1da), region = 44  ;;  %s1677_s26 = sand.u32 (!%p1493_p8), 1, %s1396_s22  }
  0x8c   : > { %s963_s20 = sshll.u32 (!%p1493_p8), %s1677_s26, 5  ;;  %s286_s19 = scalar_lea.sflag (!%p1493_p8), [#allocation3], %s1677_s26 }
  0x8d   : > { %s1681_s16 = scalar_lea.vmem (!%p1493_p8), [#allocation2], %s963_s20  ;;  %p1838_p0 = scmp.ne.s32.totalorder (!%p1493_p8), %s1824_s27, 0 }
  0x92   : > { %1371 = dma.done.wait (%p1838_p0), %s286_s19, 512  }
  0x93   : > { %1373 = vsyncadd (%p1838_p0), %s286_s19, 4294966784  ;;  %s294_s0 = sand.u32 1, %s1474_s25   ;;  %s964_s4 = sshll.u32 %s1677_s26, 6 }
  0x94   : > { %s295_s29 = scalar_lea.sflag [#allocation6], %s294_s0  ;;  %s1691_s18 = scalar_lea.vmem [#allocation5], %s964_s4 }
  0x95   : > { %1375 = dma.done.wait (%p1838_p0), %s295_s29, 1024  }
  0x96   : > { %1377 = vsyncadd (%p1838_p0), %s295_s29, 4294966272  ;;  %p1839_p8 = scmp.eq.s32.totalorder %s1474_s25, 0 }
  0x98   : > { %1379 = dma.done.wait (%p1839_p8), [#allocation6], 2048   ;;  %p1840_p11 = pmov %p1839_p8 }
  0x99   : > { %p1841_p2 = pmov %p1839_p8 }
  0x9a   : > { %1381 = vsyncadd (%p1840_p11), [#allocation6], 4294965248 }
  0x9b   : > { %1383 = dma.done.wait (%p1841_p2), [#allocation9], 4096   ;;  %p1842_p12 = pmov %p1841_p2 }
  0x9c   : > { %v1414_v0 = vmov 0   ;;  %v1106_v1 = vld [vmem:[#allocation8 + $0x4] ss:$8 sps:$4 sm:$0xff]   ;;  %v1108_v2 = vld [vmem:[#allocation8] ss:$8 sps:$4 sm:$0xff]   ;;  %v1710_v35 = vld [vmem:[%s1691_s18 + $0x18] sm:$0xff] }
  0x9d   : > { %1385 = vsyncadd (%p1842_p12), [#allocation9], 4294963200  ;;  %498 = vmatprep.mubr.bf16.mxu0 %v1414_v0  ;;  %727 = vmatprep.subr.bf16.mxu1 %v1106_v1  ;;  %v1109_v3 = vld [vmem:[#allocation8 + $0x14] ss:$8 sps:$4 sm:$0xff]   ;;  %v1111_v4 = vld [vmem:[#allocation8 + $0x10] ss:$8 sps:$4 sm:$0xff]  }
  0x9e   : > { %728 = vmatpush1.bf16.msra.mxu1 %v1108_v2  ;;  %v1112_v5 = vld [vmem:[#allocation8 + $0x24] ss:$8 sps:$4 sm:$0xff]   ;;  %v1114_v6 = vld [vmem:[#allocation8 + $0x20] ss:$8 sps:$4 sm:$0xff]   ;;  %v1115_v7 = vld [vmem:[#allocation8 + $0x34] ss:$8 sps:$4 sm:$0xff]  }
  0x9f   : > { %729 = vmatprep.subr.bf16.mxu1 %v1109_v3  ;;  %v1127_v8 = vld [vmem:[#allocation7 + $0x4] ss:$8 sps:$4 sm:$0xff]   ;;  %v1129_v9 = vld [vmem:[#allocation7] ss:$8 sps:$4 sm:$0xff]   ;;  %v1117_v10 = vld [vmem:[#allocation8 + $0x30] ss:$8 sps:$4 sm:$0xff]   ;;  %v376_v3 = vlaneseq }
  0xa0   : > { %v1118_v11 = vld [vmem:[#allocation8 + $0x44] ss:$8 sps:$4 sm:$0xff]   ;;  %466 = vmatprep.subr.bf16.mxu0 %v1127_v8  ;;  %v1133_v12 = vld [vmem:[#allocation7 + $0x14] ss:$8 sps:$4 sm:$0xff]   ;;  %v1135_v13 = vld [vmem:[#allocation7 + $0x10] ss:$8 sps:$4 sm:$0xff]  }
  0xa1   : > { %467 = vmatpush1.bf16.msra.mxu0 %v1129_v9  ;;  %v1120_v14 = vld [vmem:[#allocation8 + $0x40] ss:$8 sps:$4 sm:$0xff]   ;;  %v1139_v15 = vld [vmem:[#allocation7 + $0x24] ss:$8 sps:$4 sm:$0xff]   ;;  %v1121_v16 = vld [vmem:[#allocation8 + $0x54] ss:$8 sps:$4 sm:$0xff]  }
  0xa2   : > { %730 = vmatpush1.bf16.msra.mxu1 %v1111_v4  ;;  %468 = vmatprep.subr.bf16.mxu0 %v1133_v12  ;;  %v1141_v17 = vld [vmem:[#allocation7 + $0x20] ss:$8 sps:$4 sm:$0xff]   ;;  %v1145_v18 = vld [vmem:[#allocation7 + $0x34] ss:$8 sps:$4 sm:$0xff]   ;;  %v1123_v19 = vld [vmem:[#allocation8 + $0x50] ss:$8 sps:$4 sm:$0xff]  }
  0xa3   : > { %731 = vmatprep.subr.bf16.mxu1 %v1112_v5  ;;  %v1124_v20 = vld [vmem:[#allocation8 + $0x64] ss:$8 sps:$4 sm:$0xff]   ;;  %v1147_v21 = vld [vmem:[#allocation7 + $0x30] ss:$8 sps:$4 sm:$0xff]   ;;  %v1126_v23 = vld [vmem:[#allocation8 + $0x60] ss:$8 sps:$4 sm:$0xff]  }
  0xa4   : > { %v1151_v22 = vld [vmem:[#allocation7 + $0x44] ss:$8 sps:$4 sm:$0xff]   ;;  %v1130_v24 = vld [vmem:[#allocation8 + $0x74] ss:$8 sps:$4 sm:$0xff]   ;;  %v1153_v25 = vld [vmem:[#allocation7 + $0x40] ss:$8 sps:$4 sm:$0xff]  }
  0xa5   : > { %469 = vmatpush1.bf16.msra.mxu0 %v1135_v13  ;;  %v1157_v26 = vld [vmem:[#allocation7 + $0x54] ss:$8 sps:$4 sm:$0xff]   ;;  %v1132_v27 = vld [vmem:[#allocation8 + $0x70] ss:$8 sps:$4 sm:$0xff]   ;;  %v1136_v28 = vld [vmem:[#allocation8 + $0x84] ss:$8 sps:$4 sm:$0xff]  }
  0xa6   : > { %732 = vmatpush1.bf16.msra.mxu1 %v1114_v6  ;;  %470 = vmatprep.subr.bf16.mxu0 %v1139_v15  ;;  %v1159_v29 = vld [vmem:[#allocation7 + $0x50] ss:$8 sps:$4 sm:$0xff]   ;;  %v1163_v30 = vld [vmem:[#allocation7 + $0x64] ss:$8 sps:$4 sm:$0xff]   ;;  %v1138_v31 = vld [vmem:[#allocation8 + $0x80] ss:$8 sps:$4 sm:$0xff]  }
  0xa7   : > { %733 = vmatprep.subr.bf16.mxu1 %v1115_v7  ;;  %v1142_v32 = vld [vmem:[#allocation8 + $0x94] ss:$8 sps:$4 sm:$0xff]   ;;  %v1707_v33 = vld [vmem:[%s1691_s18 + $0x8] sm:$0xff]  ;;  %v1144_v38 = vld [vmem:[#allocation8 + $0x90] ss:$8 sps:$4 sm:$0xff]   ;;  %v377_v7 = vshrl.u32 %v376_v3, 7 }
  0xa8   : > { %v1165_v34 = vld [vmem:[#allocation7 + $0x60] ss:$8 sps:$4 sm:$0xff]   ;;  %v1169_v36 = vld [vmem:[#allocation7 + $0x74] ss:$8 sps:$4 sm:$0xff]   ;;  %v520_v37 = vpack.c.bf16 %v1710_v35, %v1707_v33  ;;  %v1148_v39 = vld [vmem:[#allocation8 + $0xa4] ss:$8 sps:$4 sm:$0xff]  }
  0xa9   : > { %471 = vmatpush1.bf16.msra.mxu0 %v1141_v17  ;;  %v1171_v40 = vld [vmem:[#allocation7 + $0x70] ss:$8 sps:$4 sm:$0xff]   ;;  %v352_v41 = vld [vmem:[%s1681_s16] sm:$0xff]  ;;  %v353_v42 = vld [vmem:[%s1681_s16 + $0x8] sm:$0xff]  ;;  %v378_v9 = vsub.s32 0, %v377_v7  ;;  %s339_s14 = scalar_lea.vmem [#allocation10], %s964_s4 }
  0xaa   : > { %734 = vmatpush1.bf16.msra.mxu1 %v1117_v10  ;;  %472 = vmatprep.subr.bf16.mxu0 %v1145_v18  ;;  %v1150_v43 = vld [vmem:[#allocation8 + $0xa0] ss:$8 sps:$4 sm:$0xff]   ;;  %v1154_v44 = vld [vmem:[#allocation8 + $0xb4] ss:$8 sps:$4 sm:$0xff]   ;;  %v356_v45 = vpack.c.bf16 %v353_v42, %v352_v41  ;;  %v1156_v46 = vld [vmem:[#allocation8 + $0xb0] ss:$8 sps:$4 sm:$0xff]  }
  0xab   : > { %735 = vmatprep.subr.bf16.mxu1 %v1118_v11  ;;  %759 = vmatprep.mubr.bf16.mxu1 %v520_v37  ;;  %v1160_v47 = vld [vmem:[#allocation8 + $0xc4] ss:$8 sps:$4 sm:$0xff]   ;;  %v354_v48 = vld [vmem:[%s1681_s16 + $0x10] sm:$0xff]  ;;  %v355_v49 = vld [vmem:[%s1681_s16 + $0x18] sm:$0xff]  ;;  %v382_v11 = vsub.s32 1, %v377_v7  ;;  %s1026_s2 = sshll.u32 %s1474_s25, 10 }
  0xac   : > { %v1162_v50 = vld [vmem:[#allocation8 + $0xc0] ss:$8 sps:$4 sm:$0xff]   ;;  %v1166_v51 = vld [vmem:[#allocation8 + $0xd4] ss:$8 sps:$4 sm:$0xff]   ;;  %v357_v52 = vpack.c.bf16 %v355_v49, %v354_v48  ;;  %v1168_v53 = vld [vmem:[#allocation8 + $0xd0] ss:$8 sps:$4 sm:$0xff]   ;;  %s1763_s11 = scalar_lea.hbm %s1815_s6, %s1026_s2 }
  0xad   : > { %473 = vmatpush1.bf16.msra.mxu0 %v1147_v21  ;;  %v1172_v54 = vld [vmem:[#allocation8 + $0xe4] ss:$8 sps:$4 sm:$0xff]   ;;  %v1174_v55 = vld [vmem:[#allocation8 + $0xe0] ss:$8 sps:$4 sm:$0xff]   ;;  %v1175_v56 = vld [vmem:[#allocation8 + $0xf4] ss:$8 sps:$4 sm:$0xff]  }
  0xae   : > { %736 = vmatpush1.bf16.msra.mxu1 %v1120_v14  ;;  %474 = vmatprep.subr.bf16.mxu0 %v1151_v22  ;;  %v1177_v57 = vld [vmem:[#allocation8 + $0xf0] ss:$8 sps:$4 sm:$0xff]   ;;  %v1720_v58 = vld [vmem:[%s1691_s18] sm:$0xff]  ;;  %v1726_v60 = vld [vmem:[%s1691_s18 + $0x28] sm:$0xff]  ;;  %s835_s30 = sshll.u32 %s339_s14, 4  ;;  %s821_s25 = scalar_lea.sflag [#allocation4], %s1677_s26  ;;  %s1765_s30 = int_to_ptr.vmem [resolvable:$true] %s835_s30 }
  0xaf   : > { %737 = vmatprep.subr.bf16.mxu1 %v1121_v16  ;;  %v1723_v59 = vld [vmem:[%s1691_s18 + $0x10] sm:$0xff]  ;;  %v1729_v61 = vld [vmem:[%s1691_s18 + $0x38] sm:$0xff]  ;;  %v374_v10 = vld [vmem:[%s1812_s3] sm:$0x3]  ;;  %s1326_s10 = scalar_lea.vmem %s1765_s30, 1024  ;;  %p1843_p13 = scmp.ne.s32.totalorder %s1831_s9, 0 }
  0xb0   : > { %v519_v62 = vpack.c.bf16 %v1723_v59, %v1720_v58  ;;  %v522_v63 = vpack.c.bf16 %v1729_v61, %v1726_v60  ;;  %v1739_v1 = vld [vmem:[%s1691_s18 + $0x30] sm:$0xff]  ;;  %v379_v15 = vrot.slane %v374_v10, %v378_v9  ;;  %v383_v17 = vrot.slane %v374_v10, %v382_v11  ;;  %p1327_p1 = scmp.ne.s32.totalorder %s1765_s30, %s1326_s10  ;;  %s1415_s20 = smov [#allocation10]  }
  0xb1   : > { %475 = vmatpush1.bf16.msra.mxu0 %v1153_v25  ;;  %s1330_s19 = sshll.u32 %s1415_s20, 4  ;;  %s1331_s19 = int_to_ptr.vmem [resolvable:$false] %s1330_s19 }
  0xb2   : > { %738 = vmatpush1.bf16.msra.mxu1 %v1123_v19  ;;  %476 = vmatprep.subr.bf16.mxu0 %v1157_v26  ;;  %p1328_p6 = pnand %p1327_p1, %p1843_p13  ;;  %s1332_s16 = scalar_lea.vmem %s1331_s19, 2048 }
  0xb3   : > { %739 = vmatprep.subr.bf16.mxu1 %v1124_v20  ;;  %v555_v20 = vld [vmem:[%s1814_s5] sm:$0x3]  ;;  %p1333_p4 = scmp.lt.s32.totalorder %s1765_s30, %s1331_s19  ;;  %p1334_p5 = scmp.lt.s32.totalorder %s1332_s16, %s1326_s10 }
  0xb4   : > { %v564_v25 = vrot.slane %v555_v20, %v382_v11  ;;  %p1329_p10 = pneg %p1328_p6 }
  0xb5   : > { %477 = vmatpush1.bf16.msra.mxu0 %v1159_v29  ;;  %p1335_p3 = por %p1334_p5, %p1333_p4 }
  0xb6   : > { %740 = vmatpush1.bf16.msra.mxu1 %v1126_v23  ;;  %478 = vmatprep.subr.bf16.mxu0 %v1163_v30  ;;  %v560_v23 = vrot.slane %v555_v20, %v378_v9 }
  0xb7   : > { %741 = vmatprep.subr.bf16.mxu1 %v1130_v24  ;;  %p1336_p7 = pnand %p1335_p3, %p1329_p10 }
  0xb9   : > { %479 = vmatpush1.bf16.msra.mxu0 %v1165_v34 }
  0xba   : > { %742 = vmatpush1.bf16.msra.mxu1 %v1132_v27  ;;  %480 = vmatprep.subr.bf16.mxu0 %v1169_v36 }
  0xbb   : > { %743 = vmatprep.subr.bf16.mxu1 %v1136_v28 }
  0xbd   : > { %481 = vmatpush1.bf16.msra.mxu0 %v1171_v40 }
  0xbe   : > { %744 = vmatpush1.bf16.msra.mxu1 %v1138_v31 }
  0xbf   : > { %745 = vmatprep.subr.bf16.mxu1 %v1142_v32 }
  0xc0   : > { %499 = vmatmul.mubr.bf16.vlgmr.msra.gmra.mrb[0].mxu0 %v356_v45 }
  0xc1   : > { %508 = vmatprep.mubr.bf16.mxu0 %v1414_v0  ;;  %v1736_v0 = vld [vmem:[%s1691_s18 + $0x20] sm:$0xff] }
  0xc2   : > { %746 = vmatpush1.bf16.msra.mxu1 %v1144_v38  ;;  %v521_v2 = vpack.c.bf16 %v1739_v1, %v1736_v0 }
  0xc3   : > { %747 = vmatprep.subr.bf16.mxu1 %v1148_v39 }
  0xc6   : > { %748 = vmatpush1.bf16.msra.mxu1 %v1150_v43 }
  0xc7   : > { %749 = vmatprep.subr.bf16.mxu1 %v1154_v44 }
  0xc8   : > { %509 = vmatmul.mubr.bf16.gmra.mrb[4].mxu0 %v357_v52 }
  0xca   : > { %750 = vmatpush1.bf16.msra.mxu1 %v1156_v46 }
  0xcb   : > { %751 = vmatprep.subr.bf16.mxu1 %v1160_v47 }
  0xce   : > { %752 = vmatpush1.bf16.msra.mxu1 %v1162_v50 }
  0xcf   : > { %753 = vmatprep.subr.bf16.mxu1 %v1166_v51 }
  0xd2   : > { %754 = vmatpush1.bf16.msra.mxu1 %v1168_v53 }
  0xd3   : > { %755 = vmatprep.subr.bf16.mxu1 %v1172_v54 }
  0xd6   : > { %756 = vmatpush1.bf16.msra.mxu1 %v1174_v55 }
  0xd7   : > { %757 = vmatprep.subr.bf16.mxu1 %v1175_v56 }
  0xda   : > { %758 = vmatpush1.bf16.msra.mxu1 %v1177_v57 }
  0xdd   : > { %760 = vmatmul.mubr.bf16.vlgmr.msra.gmra.mrb[0].mxu1 %v519_v62 }
  0xde   : > { %769 = vmatprep.mubr.bf16.mxu1 %v522_v63 }
  0xe5   : > { %770 = vmatmul.mubr.bf16.gmra.mrb[4].mxu1 %v521_v2 }
 0x193   : > { %v500_v4 = vpop.f32.mrb[0].mxu0 }
 0x194   : > { %v502_v5 = vpop.f32.mrb[1].mxu0  ;;  %v501_v18 = vadd.f32 %v500_v4, %v379_v15 }
 0x195   : > { %v504_v6 = vpop.f32.mrb[2].mxu0  ;;  %v503_v19 = vadd.f32 %v502_v5, %v383_v17 }
 0x196   : > { %v506_v8 = vpop.f32.mrb[3].mxu0  ;;  %v505_v21 = vadd.f32 %v504_v6, %v379_v15  ;;  %1178 = vtanh.f32 %v501_v18 }
 0x197   : > { %v507_v22 = vadd.f32 %v506_v8, %v383_v17  ;;  %1180 = vtanh.f32 %v503_v19 }
 0x198   : > { %1182 = vtanh.f32 %v505_v21 }
 0x199   : > { %1184 = vtanh.f32 %v507_v22 }
 0x19b   : > { %v510_v12 = vpop.f32.mrb[4].mxu0 }
 0x19c   : > { %v512_v13 = vpop.f32.mrb[5].mxu0  ;;  %v511_v24 = vadd.f32 %v510_v12, %v379_v15 }
 0x19d   : > { %v514_v14 = vpop.f32.mrb[6].mxu0  ;;  %v513_v26 = vadd.f32 %v512_v13, %v383_v17 }
 0x19e   : > { %v516_v16 = vpop.f32.mrb[7].mxu0  ;;  %1186 = vtanh.f32 %v511_v24  ;;  %v515_v37 = vadd.f32 %v514_v14, %v379_v15 }
 0x19f   : > { %1188 = vtanh.f32 %v513_v26  ;;  %v517_v38 = vadd.f32 %v516_v16, %v383_v17 }
 0x1a0   : > { %v1179_v39 = vpop.eup %1178 }
 0x1a1   : > { %v1181_v40 = vpop.eup %1180  ;;  %v788_v46 = vadd.f32 %v1179_v39, %v1720_v58 }
 0x1a2   : > { %v1183_v42 = vpop.eup %1182  ;;  %v789_v50 = vadd.f32 %v1181_v40, %v1707_v33 }
 0x1a3   : > { %v1185_v45 = vpop.eup %1184  ;;  %v790_v57 = vadd.f32 %v1183_v42, %v1723_v59 }
 0x1a4   : > { %v791_v63 = vadd.f32 %v1185_v45, %v1710_v35 }
 0x1a8   : > { %v1187_v49 = vpop.eup %1186 }
 0x1a9   : > { %v1189_v53 = vpop.eup %1188  ;;  %v792_v5 = vadd.f32 %v1187_v49, %v1736_v0 }
 0x1aa   : > { %v793_v59 = vadd.f32 %v1189_v53, %v1726_v60 }
 0x1b0   : > { %v761_v27 = vpop.f32.mrb[0].mxu1 }
 0x1b1   : > { %v762_v28 = vadd.f32 %v761_v27, %v560_v23  ;;  %v763_v29 = vpop.f32.mrb[1].mxu1 }
 0x1b2   : > { %v764_v30 = vadd.f32 %v763_v29, %v564_v25  ;;  %v765_v31 = vpop.f32.mrb[2].mxu1 }
 0x1b3   : > { %1190 = vtanh.f32 %v762_v28  ;;  %v766_v32 = vadd.f32 %v765_v31, %v560_v23  ;;  %v767_v34 = vpop.f32.mrb[3].mxu1 }
 0x1b4   : > { %1192 = vtanh.f32 %v764_v30  ;;  %v768_v36 = vadd.f32 %v767_v34, %v564_v25 }
 0x1b5   : > { %1194 = vtanh.f32 %v766_v32 }
 0x1b6   : > { %1196 = vtanh.f32 %v768_v36 }
 0x1b7   : > { %1198 = vtanh.f32 %v515_v37 }
 0x1b8   : > { %v771_v41 = vpop.f32.mrb[4].mxu1  ;;  %1200 = vtanh.f32 %v517_v38 }
 0x1b9   : > { %v772_v43 = vadd.f32 %v771_v41, %v560_v23  ;;  %v773_v44 = vpop.f32.mrb[5].mxu1 }
 0x1ba   : > { %v774_v47 = vadd.f32 %v773_v44, %v564_v25  ;;  %v775_v48 = vpop.f32.mrb[6].mxu1 }
 0x1bb   : > { %1202 = vtanh.f32 %v772_v43  ;;  %v776_v51 = vadd.f32 %v775_v48, %v560_v23  ;;  %v777_v52 = vpop.f32.mrb[7].mxu1 }
 0x1bc   : > { %1204 = vtanh.f32 %v774_v47  ;;  %v778_v54 = vadd.f32 %v777_v52, %v564_v25 }
 0x1bd   : > { %v1191_v55 = vpop.eup %1190  ;;  %1206 = vtanh.f32 %v776_v51 }
 0x1be   : > { %v1193_v56 = vpop.eup %1192  ;;  %v804_v62 = vadd.f32 %v1191_v55, %v788_v46  ;;  %1208 = vtanh.f32 %v778_v54 }
 0x1bf   : > { %v1195_v58 = vpop.eup %1194  ;;  %v805_v2 = vadd.f32 %v1193_v56, %v789_v50 }
 0x1c0   : > { %v1197_v33 = vpop.eup %1196  ;;  %812 = vst [vmem:[%s339_s14] sm:$0xff] %v804_v62  ;;  %v806_v3 = vadd.f32 %v1195_v58, %v790_v57 }
 0x1c1   : > { %813 = vst [vmem:[%s339_s14 + $0x8] sm:$0xff] %v805_v2  ;;  %v807_v4 = vadd.f32 %v1197_v33, %v791_v63  ;;  %v1199_v6 = vpop.eup %1198 }
 0x1c2   : > { %814 = vst [vmem:[%s339_s14 + $0x10] sm:$0xff] %v806_v3  ;;  %v1201_v7 = vpop.eup %1200  ;;  %v794_v9 = vadd.f32 %v1199_v6, %v1739_v1 }
 0x1c3   : > { %815 = vst [vmem:[%s339_s14 + $0x18] sm:$0xff] %v807_v4  ;;  %v795_v12 = vadd.f32 %v1201_v7, %v1729_v61 }
 0x1c5   : > { %v1203_v8 = vpop.eup %1202 }
 0x1c6   : > { %v1205_v35 = vpop.eup %1204  ;;  %v808_v10 = vadd.f32 %v1203_v8, %v792_v5 }
 0x1c7   : > { %v1207_v11 = vpop.eup %1206  ;;  %v809_v13 = vadd.f32 %v1205_v35, %v793_v59 }
 0x1c8   : > { %v1209_v14 = vpop.eup %1208  ;;  %816 = vst [vmem:[%s339_s14 + $0x20] sm:$0xff] %v808_v10  ;;  %v810_v0 = vadd.f32 %v1207_v11, %v794_v9 }
 0x1c9   : > { %817 = vst [vmem:[%s339_s14 + $0x28] sm:$0xff] %v809_v13  ;;  %v811_v60 = vadd.f32 %v1209_v14, %v795_v12 }
 0x1ca   : > { %818 = vst [vmem:[%s339_s14 + $0x30] sm:$0xff] %v810_v0 }
 0x1cb   : > { %819 = vst [vmem:[%s339_s14 + $0x38] sm:$0xff] %v811_v60 }
 0x1cc   : > { %1339 = shalt.err (!%p1336_p7)
}
 0x1cd   : > { %s1340_s0 = scalar_lea.hbm %s1763_s11, 1024  ;;  %s1344_s18 = scalar_lea.hbm %s1815_s6, 2048 }
 0x1ce   : > { %p1341_p9 = scmp.ne.s32.totalorder %s1763_s11, %s1340_s0  ;;  %p1345_p11 = scmp.lt.u32.totalorder %s1763_s11, %s1815_s6 }
 0x1cf   : > { %p1346_p2 = scmp.lt.u32.totalorder %s1344_s18, %s1340_s0  ;;  %p1348_p1 = scmp.lt.u32.totalorder %s1340_s0, %s1763_s11 }
 0x1d0   : > { %p1342_p0 = pnand %p1341_p9, %p1843_p13 }
 0x1d1   : > { %p1347_p12 = por %p1346_p2, %p1345_p11 }
 0x1d2   : > { %p1343_p8 = pneg %p1342_p0 }
 0x1d3   : > { %p1349_p6 = por %p1348_p1, %p1347_p12 }
 0x1d5   : > { %p1350_p10 = pnand %p1349_p6, %p1343_p8 }
 0x1d7   : > { %1353 = shalt.err (!%p1350_p10)
}
 0x1d8   : > { %s1416_s12 = smov 256   ;;  %s1417_s17 = smov 16  }
 0x1d9   : > { %1039 = dma.vmem_to_hbm [thread:$0]  (%p1843_p13), %s1765_s30, 1024, %s1763_s11, %s821_s25, %s1416_s12, %s1416_s12, %s1417_s17  }
 0x1da PF: > { %s850_s14 = sand.u32 1, %s1392_s21   ;;  %p1844_p4 = scmp.ne.s32.totalorder %s1825_s28, 0 }
 0x1db   : > { %p1845_p5 = scmp.ge.s32.totalorder %s1404_s24, 2  ;;  %s851_s2 = scalar_lea.sflag [#allocation4], %s850_s14 }
 0x1dd   : > { %p1056_p3 = pnand %p1845_p5, %p1844_p4 }
 0x1df   : > { %1387 = dma.done.wait (!%p1056_p3), %s851_s2, 1024  }
 0x1e0   : > { %1389 = vsyncadd (!%p1056_p3), %s851_s2, 4294966272  ;;  %s1846_s15 = sld [smem:[#allocation16_spill]]  ;;  %p23_p7 = scmp.ge.s32.totalorder %s1569_s8, 4  }
 0x1e1   : > { %s1847_s21 = smov %s1396_s22  ;;  %s1848_s22 = smov %s1400_s23 }
 0x1e2   : > { %s1850_s24 = smov %s1569_s8  ;;  %25 = sbr.rel (!%p23_p7) target bundleno = 12 (0xc), region = 110 }
 0x1e6   : > { %s1849_s23 = smov %s1846_s15 }
 0x1e9   :  { %856 = vsyncpa [#allocation3], 1 }
 0x1ea   :  { %858 = vsyncpa [#allocation3 + $0x1], 1 }
 0x1eb   :  { %859 = vsyncpa [#allocation6], 1 }
 0x1ec   :  { %861 = vsyncpa [#allocation6 + $0x1], 1 }
 0x1ed   :  { %862 = vsyncpa [#allocation9], 1 }
 0x1ee   :  { %863 = vsyncpa [#allocation4], 1 }
 0x1ef   :  { %865 = vsyncpa [#allocation4 + $0x1], 1 }

</bundles_post_ra>
